<compile_context>
chip_gen: v6e
topology: v6e:2x2x1
jax: 0.10.0
libtpu: 0.0.40
codegen_flags: <defaults>
</compile_context>

<pallas_src>
import functools

import numpy as np
import jax
import jax.numpy as jnp
from jax import lax
from jax.experimental import pallas as pl
from jax.experimental.pallas import tpu as pltpu

RMS_EPS = float(np.finfo(np.float32).eps)  # torch.nn.RMSNorm(eps=None) default for f32


# ---------------------------------------------------------------------------
# generation-aware budgets
# ---------------------------------------------------------------------------

def _vmem_capacity_bytes():
    try:
        info = pltpu.get_tpu_info()
        for attr in ("vmem_capacity_bytes", "vmem_size_bytes", "vmem_bytes"):
            v = getattr(info, attr, None)
            if v:
                return int(v)
    except Exception:
        pass
    return 64 << 20  # conservative fallback: v7x per-TensorCore VMEM


_VMEM_CAP = _vmem_capacity_bytes()
# ~100 MiB on 128 MiB chips (v5e / v6e), ~48 MiB on v7x (64 MiB/TC); leaves
# headroom for compiler-internal scratch either way.
VMEM_LIMIT_BYTES = max(32 << 20, min(_VMEM_CAP - (16 << 20), int(_VMEM_CAP * 0.78)))


def _pick_dv_chunk(n, dv):
    """Largest divisor of Dv whose (dc, N, N) chunk transients (~10 B/elem:
    bf16 `a` + f32 `h` + f32 product) fit the per-generation transient budget."""
    budget = min(max(_VMEM_CAP // 8, 2 << 20), 16 << 20)
    target = max(1, budget // (10 * n * n))
    best = 1
    for c in range(1, dv + 1):
        if dv % c == 0 and c <= target:
            best = c
    return best


def _pick_heads_per_block(batch, heads, dv):
    """Largest divisor of `heads` giving a >=128-lane output slab, lowered until
    there are at least 4 grid steps (>= 2 per TensorCore on dual-TC chips)."""
    target = max(1, -(-128 // dv))
    divisors = [c for c in range(1, heads + 1) if heads % c == 0]
    candidates = [c for c in divisors if c <= target] or [1]
    hblk = max(candidates)
    min_steps = min(4, batch * heads)
    while hblk > 1 and (batch * heads) // hblk < min_steps:
        smaller = [c for c in divisors if c < hblk]
        if not smaller:
            break
        hblk = max(smaller)
    return hblk


# ---------------------------------------------------------------------------
# helpers shared by kernel and reference
# ---------------------------------------------------------------------------

def _rmsnorm(x, w, eps=RMS_EPS):
    ms = jnp.mean(x * x, axis=-1, keepdims=True)
    return x * lax.rsqrt(ms + eps) * w


def _softclamp(t, value):
    # TODO(synk): `attn_logits_clamp_value` is assumed to be a tanh soft-clamp
    # (Gemma-style); swap for jnp.clip(t, -v, v) if the original hard-clamps.
    return jnp.tanh(t / value) * value


def _for(n_steps, body):
    """Run body(i) for i in [0, n_steps) with a fori_loop (bounded live ranges)."""
    if n_steps <= 0:
        return
    if n_steps == 1:
        body(0)
        return

    def wrapped(i, carry):
        body(i)
        return carry

    lax.fori_loop(0, n_steps, wrapped, 0)


def _hint_multiple(idx, m):
    if isinstance(idx, (int, np.integer)):
        return int(idx)
    return pl.multiple_of(idx, m)


def _pick_tile(total, target, align):
    if total <= target:
        return total
    t = max((target // align) * align, align)
    while t > align:
        if total % t == 0:
            return t
        t -= align
    return align


# ---------------------------------------------------------------------------
# linear projection kernel (bf16 MXU operands, f32 accumulation)
# ---------------------------------------------------------------------------

def _linear_kernel(x_ref, w_ref, o_ref):
    o_ref[...] = jnp.dot(
        x_ref[...], w_ref[...], preferred_element_type=jnp.float32
    ).astype(o_ref.dtype)


def linear_pallas(x2d, w, *, out_dtype=None):
    """Row- and feature-tiled, pipelined (M,K)@(K,N) projection."""
    M, K = x2d.shape
    Kw, N = w.shape
    assert K == Kw
    out_dtype = out_dtype if out_dtype is not None else x2d.dtype
    tm = _pick_tile(M, 512, 8)
    if N <= 256:
        tn = N
    else:
        target_n = max(128, min(N, (4 << 20) // max(1, K * w.dtype.itemsize)))
        tn = _pick_tile(N, target_n, 128)
    grid = (pl.cdiv(M, tm), pl.cdiv(N, tn))
    return pl.pallas_call(
        _linear_kernel,
        out_shape=jax.ShapeDtypeStruct((M, N), out_dtype),
        grid=grid,
        in_specs=[pl.BlockSpec((tm, K), lambda i, j: (i, 0)),
                  pl.BlockSpec((K, tn), lambda i, j: (0, j))],
        out_specs=pl.BlockSpec((tm, tn), lambda i, j: (i, j)),
        compiler_params=pltpu.CompilerParams(
            dimension_semantics=("parallel", "parallel"),
            vmem_limit_bytes=VMEM_LIMIT_BYTES),
    )(x2d, w)


# ---------------------------------------------------------------------------
# Strassen attention kernel
# ---------------------------------------------------------------------------

def _strassen_kernel(q_ref, k1_ref, k2_ref, v1_ref, v2_ref,
                     qw_ref, k1w_ref, k2w_ref, o_ref,
                     num_ref, v1t_ref, v2t_ref,
                     *, causal, clamp_value, rms_eps, dv_chunk):
    # q/k1/k2 : (hblk, N, D) bf16, v1/v2 : (hblk, N, Dv) bf16, norm w : (1, D) f32
    # o_ref   : (1, N, hblk*Dv)   lane-dense output slab (one store per grid step)
    # num_ref : (hblk*Dv, N) f32  numerator scratch, transposed once at the end
    # v1t/v2t : (Dv, N)           per-head transposed values for aligned
    #                             sublane-sliced Dv-chunk reads
    hblk, n, d = q_ref.shape
    dv = v1_ref.shape[-1]
    n_chunks = dv // dv_chunk

    qw = qw_ref[0]
    k1w = k1w_ref[0]
    k2w = k2w_ref[0]

    scale = d ** -0.5
    cdn = (((1,), (1,)), ((), ()))            # contract last dims, no batch dims
    fuse_qk = (n % 128) == 0                  # aligned (N, 2N) split only

    if causal:                                # hoisted once per grid step
        row = lax.broadcasted_iota(jnp.int32, (n, n), 0)
        col = lax.broadcasted_iota(jnp.int32, (n, n), 1)
        keep = col <= row
        neg = jnp.float32(-1e30)

    def head_body(hh):
        qh = _rmsnorm(q_ref[hh].astype(jnp.float32), qw, rms_eps) * scale
        k1h = _rmsnorm(k1_ref[hh].astype(jnp.float32), k1w, rms_eps)
        k2h = _rmsnorm(k2_ref[hh].astype(jnp.float32), k2w, rms_eps)

        # pairwise sims: D-contraction matmuls are a negligible share of the total
        # FLOPs so they stay f32; the O(N^3) matmuls below use bf16 operands.
        if fuse_qk:
            k12 = jnp.concatenate([k1h, k2h], axis=0)                    # (2n, d)
            sim12 = _softclamp(
                lax.dot_general(qh, k12, cdn, preferred_element_type=jnp.float32),
                clamp_value)                                             # (n, 2n)
            sim1, sim2 = sim12[:, :n], sim12[:, n:]
        else:
            sim1 = _softclamp(
                lax.dot_general(qh, k1h, cdn, preferred_element_type=jnp.float32),
                clamp_value)
            sim2 = _softclamp(
                lax.dot_general(qh, k2h, cdn, preferred_element_type=jnp.float32),
                clamp_value)
        sim3 = _softclamp(
            lax.dot_general(k1h, k2h, cdn, preferred_element_type=jnp.float32),
            clamp_value)

        if causal:
            sim1 = jnp.where(keep, sim1, neg)
            sim2 = jnp.where(keep, sim2, neg)

        # numerically-stable shifts that cancel exactly between num and den
        # (row max for sim1/sim2, global max for sim3).
        sim1 = sim1 - jnp.max(sim1, axis=-1, keepdims=True)
        sim2 = sim2 - jnp.max(sim2, axis=-1, keepdims=True)
        sim3 = sim3 - jnp.max(jnp.max(sim3, axis=-1, keepdims=True),
                              axis=-2, keepdims=True)

        e1 = jnp.exp(sim1)                    # (i, j) f32
        e2 = jnp.exp(sim2)                    # (i, k)
        e3 = jnp.exp(sim3)                    # (j, k)
        e2b = e2.astype(jnp.bfloat16)
        e3b = e3.astype(jnp.bfloat16)

        # denominator: den[i] = sum_{j,k} e1[i,j] e2[i,k] e3[j,k]
        t = lax.dot_general(e2b, e3b, cdn, preferred_element_type=jnp.float32)
        den = jnp.sum(e1 * t, axis=-1, keepdims=True)                    # (i, 1)
        # independent shifts are not the joint max -> den can underflow for
        # pathological logit spreads; clamp so output degrades to ~0, not NaN.
        inv_den = pl.reciprocal(jnp.maximum(den, jnp.float32(1e-30)), approx=True)

        # fold 1/den into e1 via a sublane broadcast so the numerator needs no
        # separate per-head rescale / transpose.
        e1sb = (e1 * inv_den).astype(jnp.bfloat16)                       # (i, j)

        # per-head transposed values -> aligned sublane-sliced chunk reads
        v1t_ref[...] = jnp.transpose(v1_ref[hh].astype(jnp.float32)).astype(
            v1t_ref.dtype)                                               # (dv, n)
        v2t_ref[...] = jnp.transpose(v2_ref[hh].astype(jnp.float32))     # (dv, n)

        # numerator, Strassen factorization, tiled over the value-feature dim so
        # the (dc, N, N) transients stay inside the per-generation VMEM budget:
        #   a[d,i,j] = (e1[i,j]/den[i]) * v1[j,d]
        #   h[d,i,k] = sum_j a[d,i,j] * e3[j,k]           (bf16 MXU, f32 acc)
        #   num[d,i] = sum_k h[d,i,k] * e2[i,k] * v2[k,d]
        def chunk_body(c):
            c0 = _hint_multiple(c * dv_chunk, dv_chunk)
            v1c = v1t_ref[pl.ds(c0, dv_chunk), :]                        # (dc, n) bf16
            v2c = v2t_ref[pl.ds(c0, dv_chunk), :]                        # (dc, n) f32
            a = (e1sb[None, :, :] * v1c[:, None, :]).reshape(dv_chunk * n, n)
            h = jnp.dot(a, e3b,
                        preferred_element_type=jnp.float32).reshape(dv_chunk, n, n)
            numc = jnp.sum(h * e2[None, :, :] * v2c[:, None, :], axis=-1)  # (dc, n)
            row0 = _hint_multiple(hh * dv + c0, dv_chunk)
            num_ref[pl.ds(row0, dv_chunk), :] = numc

        _for(n_chunks, chunk_body)

    _for(hblk, head_body)

    # single lane-dense store: (n, hblk*dv), heads contiguous along lanes
    o_ref[0] = jnp.transpose(num_ref[...]).astype(o_ref.dtype)


def strassen_attend_pallas(q, k1, k2, v1, v2, qw, k1w, k2w,
                           *, causal=False, clamp_value=40.0, heads_per_block=1):
    # q/k1/k2: (BH, N, D) bf16, v1/v2: (BH, N, Dv) bf16, norm weights: (1, D) f32
    BH, N, D = q.shape
    Dv = v1.shape[-1]
    hblk = heads_per_block
    assert BH % hblk == 0
    G = BH // hblk
    dv_chunk = _pick_dv_chunk(N, Dv)

    kernel = functools.partial(
        _strassen_kernel, causal=causal, clamp_value=clamp_value,
        rms_eps=RMS_EPS, dv_chunk=dv_chunk)

    return pl.pallas_call(
        kernel,
        out_shape=jax.ShapeDtypeStruct((G, N, hblk * Dv), q.dtype),
        grid=(G,),
        in_specs=[
            pl.BlockSpec((hblk, N, D), lambda i: (i, 0, 0)),
            pl.BlockSpec((hblk, N, D), lambda i: (i, 0, 0)),
            pl.BlockSpec((hblk, N, D), lambda i: (i, 0, 0)),
            pl.BlockSpec((hblk, N, Dv), lambda i: (i, 0, 0)),
            pl.BlockSpec((hblk, N, Dv), lambda i: (i, 0, 0)),
            pl.BlockSpec((1, D), lambda i: (0, 0)),
            pl.BlockSpec((1, D), lambda i: (0, 0)),
            pl.BlockSpec((1, D), lambda i: (0, 0)),
        ],
        out_specs=pl.BlockSpec((1, N, hblk * Dv), lambda i: (i, 0, 0)),
        scratch_shapes=[
            pltpu.VMEM((hblk * Dv, N), jnp.float32),   # numerator accumulator
            pltpu.VMEM((Dv, N), jnp.bfloat16),         # v1^T (per head)
            pltpu.VMEM((Dv, N), jnp.float32),          # v2^T (per head)
        ],
        compiler_params=pltpu.CompilerParams(
            dimension_semantics=("parallel",),
            vmem_limit_bytes=VMEM_LIMIT_BYTES),
    )(q, k1, k2, v1, v2, qw, k1w, k2w)


# ---------------------------------------------------------------------------
# StrassenMHA forward (Pallas path) + plain-JAX reference
# ---------------------------------------------------------------------------

def _split_heads(t, h):          # (B, N, h*d) -> (B, h, N, d)
    b, n, hd = t.shape
    return t.reshape(b, n, h, hd // h).transpose(0, 2, 1, 3)


def strassen_mha_forward(x, params, cfg):
    B, N, dim = x.shape
    heads, kv_heads = cfg["heads"], cfg["kv_heads"]
    # TODO(synk): GQA (kv_heads < heads) broadcast of k/v heads not implemented.
    assert heads == kv_heads
    split_sizes = np.cumsum(cfg["split_dims"])[:-1].tolist()

    # bf16 weight / activation streaming: halves HBM<->VMEM DMA and uses the
    # MXU's native bf16 path; all matmuls accumulate in f32.
    w_qkv = params["w_qkv"].astype(jnp.bfloat16)
    w_out = params["w_out"].astype(jnp.bfloat16)
    xb = x.astype(jnp.bfloat16).reshape(B * N, dim)

    qkv = linear_pallas(xb, w_qkv, out_dtype=jnp.bfloat16).reshape(B, N, -1)
    q, k1, k2, v1, v2 = jnp.split(qkv, split_sizes, axis=-1)

    def flat(t, h):
        return _split_heads(t, h).reshape(B * h, N, -1)

    q = flat(q, heads)
    k1, k2, v1, v2 = (flat(t, kv_heads) for t in (k1, k2, v1, v2))

    dv = cfg["dim_head_values"]
    hblk = _pick_heads_per_block(B, heads, dv)

    out = strassen_attend_pallas(
        q, k1, k2, v1, v2,
        params["q_norm_w"], params["k1_norm_w"], params["k2_norm_w"],
        causal=cfg["causal"], clamp_value=cfg["clamp"], heads_per_block=hblk)

    # (G, N, hblk*dv) -> (B, N, heads*dv); head order matches '... h n d -> ... n (h d)'
    out = out.reshape(B, heads // hblk, N, hblk, dv)
    out = out.transpose(0, 2, 1, 3, 4).reshape(B * N, heads * dv)
    return linear_pallas(out, w_out, out_dtype=jnp.float32).reshape(B, N, dim)


def strassen_mha_reference(x, params, cfg):
    hp = lax.Precision.HIGHEST
    B, N, dim = x.shape
    heads, kv_heads = cfg["heads"], cfg["kv_heads"]
    split_sizes = np.cumsum(cfg["split_dims"])[:-1].tolist()

    qkv = jnp.einsum("bnd,df->bnf", x, params["w_qkv"], precision=hp)
    q, k1, k2, v1, v2 = jnp.split(qkv, split_sizes, axis=-1)
    q = _split_heads(q, heads)
    k1, k2, v1, v2 = (_split_heads(t, kv_heads) for t in (k1, k2, v1, v2))

    q = _rmsnorm(q, params["q_norm_w"][0])
    k1 = _rmsnorm(k1, params["k1_norm_w"][0])
    k2 = _rmsnorm(k2, params["k2_norm_w"][0])

    qs = q * (cfg["dim_head"] ** -0.5)
    sim1 = _softclamp(jnp.einsum("bhid,bhjd->bhij", qs, k1, precision=hp), cfg["clamp"])
    sim2 = _softclamp(jnp.einsum("bhid,bhkd->bhik", qs, k2, precision=hp), cfg["clamp"])
    sim3 = _softclamp(jnp.einsum("bhjd,bhkd->bhjk", k1, k2, precision=hp), cfg["clamp"])

    if cfg["causal"]:
        i = jnp.arange(N)
        keep = (i[None, :] <= i[:, None])
        neg = jnp.float32(-1e30)
        sim1 = jnp.where(keep, sim1, neg)
        sim2 = jnp.where(keep, sim2, neg)

    logits = sim1[..., :, :, None] + sim2[..., :, None, :] + sim3[..., None, :, :]
    b, h, n = logits.shape[:3]
    probs = jax.nn.softmax(logits.reshape(b, h, n, n * n), axis=-1).reshape(b, h, n, n, n)
    out = jnp.einsum("bhijk,bhjd,bhkd->bhid", probs, v1, v2, precision=hp)
    out = out.transpose(0, 2, 1, 3).reshape(B, N, -1)
    return jnp.einsum("bnf,fo->bno", out, params["w_out"], precision=hp)


# ---------------------------------------------------------------------------
# main
# ---------------------------------------------------------------------------

if __name__ == "__main__":
    # small, module-consistent shapes; heads*dim_head_values = 128 (lane-dense
    # merged output); sum(split_dims) = 640 (multiple of 128 -> dense qkv stores)
    B, N, dim = 2, 64, 64
    heads = kv_heads = 8
    dim_head = dim_head_values = 16
    split_dims = (dim_head * heads, dim_head * kv_heads, dim_head * kv_heads,
                  dim_head_values * kv_heads, dim_head_values * kv_heads)

    cfg = dict(heads=heads, kv_heads=kv_heads, dim_head=dim_head,
               dim_head_values=dim_head_values, split_dims=split_dims,
               causal=False, clamp=40.0)

    key = jax.random.PRNGKey(0)
    kx, kq, ko = jax.random.split(key, 3)

    # deterministic parameter init (stored pre-transposed so forward is x @ W)
    params = {
        "w_qkv": jax.random.normal(kq, (dim, sum(split_dims)), jnp.float32)
                 / np.sqrt(dim),
        "w_out": jax.random.normal(ko, (dim_head_values * kv_heads, dim), jnp.float32)
                 / np.sqrt(dim_head_values * kv_heads),
        "q_norm_w": jnp.ones((1, dim_head), jnp.float32),   # torch RMSNorm init
        "k1_norm_w": jnp.ones((1, dim_head), jnp.float32),
        "k2_norm_w": jnp.ones((1, dim_head), jnp.float32),
    }

    x = jax.random.normal(kx, (B, N, dim), jnp.float32)

    out = jax.block_until_ready(strassen_mha_forward(x, params, cfg))
    ref = jax.block_until_ready(strassen_mha_reference(x, params, cfg))

    # bf16 weight/activation streaming + bf16 MXU operands (f32 accumulation) on
    # the O(N^3) attention matmuls -> bf16-level end-to-end tolerance.
    np.testing.assert_allclose(np.asarray(out), np.asarray(ref), rtol=2e-2, atol=2e-2)

    print("KERNEL_OK")
</pallas_src>

<mosaic_0001>
module attributes {stable_mosaic.version = 11 : i64} {
  func.func @_linear_kernel(%arg0: i32, %arg1: i32, %arg2: memref<128x64xbf16, #tpu.memory_space<vmem>>, %arg3: memref<64x640xbf16, #tpu.memory_space<vmem>>, %arg4: memref<128x640xbf16, #tpu.memory_space<vmem>>) attributes {dimension_semantics = [#tpu.dimension_semantics<parallel>, #tpu.dimension_semantics<parallel>], iteration_bounds = array<i64: 1, 1>, scalar_prefetch = 0 : i64, scratch_operands = 0 : i64, tpu.core_type = #tpu.core_type<tc>, window_params = [{transform_indices = @transform_0, window_bounds = array<i64: 128, 64>}, {transform_indices = @transform_1, window_bounds = array<i64: 64, 640>}, {transform_indices = @transform_2, window_bounds = array<i64: 128, 640>}]} {
    %c0 = arith.constant 0 : index
    %c0_0 = arith.constant 0 : index
    %0 = vector.load %arg2[%c0, %c0_0] : memref<128x64xbf16, #tpu.memory_space<vmem>>, vector<128x64xbf16>
    %c0_1 = arith.constant 0 : index
    %c0_2 = arith.constant 0 : index
    %1 = vector.load %arg3[%c0_1, %c0_2] : memref<64x640xbf16, #tpu.memory_space<vmem>>, vector<64x640xbf16>
    %cst = arith.constant dense<0.000000e+00> : vector<128x640xf32>
    %2 = tpu.matmul %0, %1, %cst {dimension_numbers = #tpu.dot_dimension_numbers<[1], [0], [0], [1], [0, 0, 1, 1], [], []>} : vector<128x64xbf16>, vector<64x640xbf16>, vector<128x640xf32> -> vector<128x640xf32>
    %3 = arith.truncf %2 : vector<128x640xf32> to vector<128x640xbf16>
    %c0_3 = arith.constant 0 : index
    %c0_4 = arith.constant 0 : index
    %4 = vector.load %arg4[%c0_3, %c0_4] : memref<128x640xbf16, #tpu.memory_space<vmem>>, vector<128x640xbf16>
    tpu.vector_store %arg4[%c0_3, %c0_4], %3 {strides = array<i32>} : memref<128x640xbf16, #tpu.memory_space<vmem>>, vector<128x640xbf16>,
    return
  }
  func.func @transform_0(%arg0: i32, %arg1: i32) -> (i32, i32) {
    %c0_i32 = arith.constant 0 : i32
    %c0_i32_0 = arith.constant 0 : i32
    return %arg0, %c0_i32 : i32, i32
  }
  func.func @transform_1(%arg0: i32, %arg1: i32) -> (i32, i32) {
    %c0_i32 = arith.constant 0 : i32
    %c0_i32_0 = arith.constant 0 : i32
    return %c0_i32, %arg1 : i32, i32
  }
  func.func @transform_2(%arg0: i32, %arg1: i32) -> (i32, i32) {
    %c0_i32 = arith.constant 0 : i32
    return %arg0, %arg1 : i32, i32
  }
}

</mosaic_0001>

<bundles_post_ra>
// kernel: tpu_custom_call.1
= control target key start
LH: loop header
LB: loop body
LE: loop exit
PB: predicated region body
PF: predicated region fallthrough
CT: control target
= control target key end

     0   :  { %7 = vsyncpa [#allocation3], 0  ;;  %s1258_s0 = inlined_call_operand.vmem [shape: bf16[128,64], index: 0, kind: input, shape index: {}]   ;;  %s1259_s1 = inlined_call_operand.hbm [shape: bf16[64,640], index: 1, kind: input, shape index: {}]   ;;  %s1260_s2 = inlined_call_operand.hbm [shape: bf16[128,640], index: 2, kind: output, shape index: {}]  }
   0x1   :  { %8 = vsyncpa [#allocation4], 0  ;;  %s1157_s9 = smov [#allocation2]  }
   0x2   :  { %s16_s10 = sshll.u32 %s1157_s9, 4  ;;  %s17_s10 = int_to_ptr.vmem [resolvable:$true] %s16_s10 }
   0x3   :  { %s1121_s11 = scalar_lea.vmem %s17_s10, 2560  ;;  %p1126_p1 = scmp.lt.s32.totalorder %s17_s10, %s17_s10 }
   0x4   :  { %p1122_p0 = scmp.ne.s32.totalorder %s17_s10, %s1121_s11  ;;  %p1127_p2 = scmp.lt.s32.totalorder %s1121_s11, %s1121_s11 }
   0x6   :  { %p1128_p3 = por %p1127_p2, %p1126_p1 }
   0x8   :  { %p1129_p4 = pnand %p1128_p3, %p1122_p0 }
   0xa   :  { %1132 = shalt.err (!%p1129_p4)
}
   0xb   :  { %s1158_s12 = smov 320   ;;  %s1159_s13 = smov 20  }
   0xc   :  { %22 = dma.hbm_to_vmem [thread:$0]  %s1259_s1, 2560, %s17_s10, [#allocation3], %s1158_s12, %s1158_s12, %s1159_s13  }
   0xd   :  { %1153 = dma.done.wait [#allocation3], 2560  }
   0xe   :  { %1154 = vsyncadd [#allocation3], 4294964736  ;;  %v1160_v0 = vmov 0   ;;  %v1077_v1 = vld [vmem:[#allocation2 + $0x7c] ss:$20 sps:$4 sm:$0xff]   ;;  %v1089_v11 = vld [vmem:[%s1258_s0] sm:$0xff]  }
   0xf   :  { %268 = vmatprep.mubr.bf16.mxu0 %v1160_v0  ;;  %328 = vmatprep.mubr.bf16.mxu1 %v1160_v0  ;;  %v1079_v2 = vld [vmem:[#allocation2 + $0x78] ss:$20 sps:$4 sm:$0xff]   ;;  %v1080_v3 = vld [vmem:[#allocation2 + $0x54] ss:$20 sps:$4 sm:$0xff]   ;;  %v1082_v4 = vld [vmem:[#allocation2 + $0x50] ss:$20 sps:$4 sm:$0xff]  }
  0x10   :  { %244 = vmatprep.subr.bf16.mxu0 %v1077_v1  ;;  %1064 = vmatprep.subr.bf16.mxu1 %v1077_v1  ;;  %v1083_v5 = vld [vmem:[#allocation2 + $0x2c] ss:$20 sps:$4 sm:$0xff]   ;;  %v1085_v6 = vld [vmem:[#allocation2 + $0x28] ss:$20 sps:$4 sm:$0xff]   ;;  %v1086_v7 = vld [vmem:[#allocation2 + $0x4] ss:$20 sps:$4 sm:$0xff]  }
  0x11   :  { %245 = vmatpush1.bf16.msra.mxu0 %v1079_v2  ;;  %1068 = vmatpush1.bf16.msra.mxu1 %v1079_v2  ;;  %v1088_v8 = vld [vmem:[#allocation2] ss:$20 sps:$4 sm:$0xff]   ;;  %v1093_v9 = vld [vmem:[#allocation2 + $0x84] ss:$20 sps:$4 sm:$0xff]   ;;  %v1094_v10 = vld [vmem:[#allocation2 + $0x88] ss:$20 sps:$4 sm:$0xff]  }
  0x12   :  { %246 = vmatprep.subr.bf16.mxu0 %v1080_v3  ;;  %1065 = vmatprep.subr.bf16.mxu1 %v1080_v3  ;;  %v1191_v12 = vld [vmem:[%s1258_s0 + $0x30] sm:$0xff]   ;;  %vm211_vm0 = vcmask 523264   ;;  %v1095_v16 = vld [vmem:[#allocation2 + $0x58] ss:$20 sps:$4 sm:$0xff]   ;;  %v1103_v24 = vld [vmem:[#allocation2 + $0x8] ss:$20 sps:$4 sm:$0xff]  }
  0x13   :  { %v1091_v13 = vld [vmem:[#allocation2 + $0x80] ss:$20 sps:$4 sm:$0xff]   ;;  %v1097_v14 = vld [vmem:[#allocation2 + $0x5c] ss:$20 sps:$4 sm:$0xff]   ;;  %v1109_v18 = vld [vmem:[#allocation2 + $0x38] ss:$20 sps:$4 sm:$0xff]  }
  0x14   :  { %v1106_v15 = vld [vmem:[#allocation2 + $0x60] ss:$20 sps:$4 sm:$0xff]   ;;  %v1098_v19 = vld [vmem:[%s1258_s0 + $0x8] sm:$0xff]   ;;  %v1099_v20 = vld [vmem:[%s1258_s0 + $0x38] sm:$0xff]  }
  0x15   :  { %247 = vmatpush1.bf16.msra.mxu0 %v1082_v4  ;;  %1069 = vmatpush1.bf16.msra.mxu1 %v1082_v4  ;;  %v1102_v17 = vld [vmem:[#allocation2 + $0x34] ss:$20 sps:$4 sm:$0xff]   ;;  %v1100_v21 = vld [vmem:[#allocation2 + $0x30] ss:$20 sps:$4 sm:$0xff]   ;;  %v1105_v22 = vld [vmem:[#allocation2 + $0xc] ss:$20 sps:$4 sm:$0xff]  }
  0x16   :  { %248 = vmatprep.subr.bf16.mxu0 %v1083_v5  ;;  %1066 = vmatprep.subr.bf16.mxu1 %v1083_v5  ;;  %v1111_v23 = vld [vmem:[#allocation2 + $0x10] ss:$20 sps:$4 sm:$0xff]   ;;  %v1108_v26 = vld [vmem:[%s1258_s0 + $0x18] sm:$0xff]   ;;  %v1112_v28 = vld [vmem:[%s1258_s0 + $0x28] sm:$0xff]  }
  0x17   :  { %v1107_v25 = vld [vmem:[%s1258_s0 + $0x10] sm:$0xff]   ;;  %v1110_v27 = vld [vmem:[%s1258_s0 + $0x20] sm:$0xff]   ;;  %s1161_s0 = smov [#allocation5]  }
  0x18   :  { %s868_s3 = sshll.u32 %s1161_s0, 4  ;;  %s869_s3 = int_to_ptr.vmem [resolvable:$true] %s868_s3 }
  0x19   :  { %249 = vmatpush1.bf16.msra.mxu0 %v1085_v6  ;;  %1070 = vmatpush1.bf16.msra.mxu1 %v1085_v6  ;;  %s1133_s4 = scalar_lea.vmem %s869_s3, 5120  ;;  %p1138_p6 = scmp.lt.s32.totalorder %s869_s3, %s869_s3 }
  0x1a   :  { %250 = vmatprep.subr.bf16.mxu0 %v1086_v7  ;;  %1067 = vmatprep.subr.bf16.mxu1 %v1086_v7  ;;  %p1134_p5 = scmp.ne.s32.totalorder %s869_s3, %s1133_s4  ;;  %p1139_p7 = scmp.lt.s32.totalorder %s1133_s4, %s1133_s4 }
  0x1c   :  { %p1140_p8 = por %p1139_p7, %p1138_p6 }
  0x1d   :  { %251 = vmatpush1.bf16.msra.mxu0 %v1088_v8  ;;  %1071 = vmatpush1.bf16.msra.mxu1 %v1088_v8 }
  0x1e   :  { %357 = vmatprep.subr.bf16.mxu1 %v1093_v9  ;;  %1040 = vmatprep.subr.bf16.mxu0 %v1094_v10  ;;  %p1141_p9 = pnand %p1140_p8, %p1134_p5 }
  0x20   :  { %908 = vmatmul.mubr.msk.bf16.vlgmr.msra.gmra.mxu0 %vm211_vm0, %v1089_v11  ;;  %914 = vmatmul.mubr.msk.bf16.vlgmr.msra.gmra.mxu1 %vm211_vm0, %v1191_v12 }
  0x21   :  { %358 = vmatpush1.bf16.msra.mxu1 %v1091_v13  ;;  %1041 = vmatpush3.bf16.msra.mxu0 %v1094_v10 }
  0x22   :  { %359 = vmatprep.subr.bf16.mxu1 %v1097_v14  ;;  %278 = vmatprep.mubr.bf16.mxu0 %v1160_v0 }
  0x23   :  { %338 = vmatprep.mubr.bf16.mxu1 %v1160_v0  ;;  %1042 = vmatprep.subr.bf16.mxu0 %v1106_v15 }
  0x25   :  { %360 = vmatpush1.bf16.msra.mxu1 %v1095_v16  ;;  %1043 = vmatpush3.bf16.msra.mxu0 %v1106_v15 }
  0x26   :  { %361 = vmatprep.subr.bf16.mxu1 %v1102_v17  ;;  %1044 = vmatprep.subr.bf16.mxu0 %v1109_v18 }
  0x28   :  { %909 = vmatmul.mubr.msk.bf16.gmra.mxu0 %vm211_vm0, %v1098_v19  ;;  %915 = vmatmul.mubr.msk.bf16.gmra.mxu1 %vm211_vm0, %v1099_v20 }
  0x29   :  { %362 = vmatpush1.bf16.msra.mxu1 %v1100_v21  ;;  %288 = vmatprep.mubr.bf16.mxu0 %v1160_v0 }
  0x2a   :  { %363 = vmatprep.subr.bf16.mxu1 %v1105_v22  ;;  %381 = vmatprep.mubr.bf16.mxu1 %v1160_v0 }
  0x2b   :  { %1045 = vmatpush3.bf16.msra.mxu0 %v1109_v18 }
  0x2c   :  { %1046 = vmatprep.subr.bf16.mxu0 %v1111_v23 }
  0x2d   :  { %364 = vmatpush1.bf16.msra.mxu1 %v1103_v24 }
  0x2f   :  { %1047 = vmatpush3.bf16.msra.mxu0 %v1111_v23 }
  0x30   :  { %910 = vmatmul.mubr.msk.bf16.gmra.mxu0 %vm211_vm0, %v1107_v25  ;;  %916 = vmatmul.mubr.msk.bf16.vlgmr.msra.gmra.mxu1 %vm211_vm0, %v1089_v11 }
  0x31   :  { %298 = vmatprep.mubr.bf16.mxu0 %v1160_v0  ;;  %391 = vmatprep.mubr.bf16.mxu1 %v1160_v0 }
  0x38   :  { %911 = vmatmul.mubr.msk.bf16.gmra.mxu0 %vm211_vm0, %v1108_v26  ;;  %917 = vmatmul.mubr.msk.bf16.gmra.mxu1 %vm211_vm0, %v1098_v19 }
  0x39   :  { %308 = vmatprep.mubr.bf16.mxu0 %v1160_v0  ;;  %401 = vmatprep.mubr.bf16.mxu1 %v1160_v0 }
  0x40   :  { %912 = vmatmul.mubr.msk.bf16.gmra.mxu0 %vm211_vm0, %v1110_v27  ;;  %918 = vmatmul.mubr.msk.bf16.gmra.mxu1 %vm211_vm0, %v1107_v25 }
  0x41   :  { %318 = vmatprep.mubr.bf16.mxu0 %v1160_v0  ;;  %411 = vmatprep.mubr.bf16.mxu1 %v1160_v0 }
  0x48   :  { %913 = vmatmul.mubr.msk.bf16.gmra.mxu0 %vm211_vm0, %v1112_v28  ;;  %919 = vmatmul.mubr.msk.bf16.gmra.mxu1 %vm211_vm0, %v1108_v26 }
  0x49   :  { %421 = vmatprep.mubr.bf16.mxu1 %v1160_v0  ;;  %1048 = vmatprep.mubr.msk.bf16.mxu0 %vm211_vm0, %v1089_v11 }
  0x50   :  { %920 = vmatmul.mubr.msk.bf16.gmra.mxu1 %vm211_vm0, %v1110_v27  ;;  %1049 = vmatmul.mubr.msk.bf16.vlgmr.msra.gmra.mxu0 %vm211_vm0, %v1098_v19 }
  0x51   :  { %431 = vmatprep.mubr.bf16.mxu1 %v1160_v0  ;;  %1052 = vmatprep.mubr.msk.bf16.mxu0 %vm211_vm0, %v1107_v25 }
  0x58   :  { %921 = vmatmul.mubr.msk.bf16.gmra.mxu1 %vm211_vm0, %v1112_v28  ;;  %1053 = vmatmul.mubr.msk.bf16.gmra.mxu0 %vm211_vm0, %v1108_v26 }
  0x59   :  { %441 = vmatprep.mubr.bf16.mxu1 %v1160_v0  ;;  %1056 = vmatprep.mubr.msk.bf16.mxu0 %vm211_vm0, %v1110_v27 }
  0x60   :  { %922 = vmatmul.mubr.msk.bf16.gmra.mxu1 %vm211_vm0, %v1191_v12  ;;  %1057 = vmatmul.mubr.msk.bf16.gmra.mxu0 %vm211_vm0, %v1112_v28 }
  0x61   :  { %451 = vmatprep.mubr.bf16.mxu1 %v1160_v0  ;;  %1060 = vmatprep.mubr.msk.bf16.mxu0 %vm211_vm0, %v1191_v12 }
  0x68   :  { %923 = vmatmul.mubr.msk.bf16.gmra.mxu1 %vm211_vm0, %v1099_v20  ;;  %1061 = vmatmul.mubr.msk.bf16.gmra.mxu0 %vm211_vm0, %v1099_v20 }
  0xe0   :  { %v270_v29 = vpop.f32.mrf.mxu0  ;;  %v330_v30 = vpop.f32.mrf.mxu1 }
  0xe2   :  { %v272_v31 = vpop.f32.mrf.mxu0  ;;  %v332_v32 = vpop.f32.mrf.mxu1 }
  0xe3   :  { %v980_v33 = vpack.c.bf16 %v272_v31, %v270_v29  ;;  %v1016_v34 = vpack.c.bf16 %v332_v32, %v330_v30 }
  0xe4   :  { %v274_v35 = vpop.f32.mrf.mxu0  ;;  %v334_v36 = vpop.f32.mrf.mxu1 }
  0xe5   :  { %815 = vst [vmem:[#allocation5] sm:$0xff] %v980_v33  ;;  %851 = vst [vmem:[#allocation5 + $0xf0] sm:$0xff] %v1016_v34 }
  0xe6   :  { %v276_v37 = vpop.f32.mrf.mxu0  ;;  %v336_v38 = vpop.f32.mrf.mxu1 }
  0xe7   :  { %v983_v39 = vpack.c.bf16 %v276_v37, %v274_v35  ;;  %v1019_v40 = vpack.c.bf16 %v336_v38, %v334_v36 }
  0xe8   :  { %v280_v41 = vpop.f32.mrf.mxu0  ;;  %v340_v42 = vpop.f32.mrf.mxu1 }
  0xe9   :  { %818 = vst [vmem:[#allocation5 + $0x14] sm:$0xff] %v983_v39  ;;  %854 = vst [vmem:[#allocation5 + $0x104] sm:$0xff] %v1019_v40 }
  0xea   :  { %v282_v43 = vpop.f32.mrf.mxu0  ;;  %v342_v44 = vpop.f32.mrf.mxu1 }
  0xeb   :  { %v986_v45 = vpack.c.bf16 %v282_v43, %v280_v41  ;;  %v1022_v46 = vpack.c.bf16 %v342_v44, %v340_v42 }
  0xec   :  { %v284_v47 = vpop.f32.mrf.mxu0  ;;  %v344_v48 = vpop.f32.mrf.mxu1 }
  0xed   :  { %821 = vst [vmem:[#allocation5 + $0x28] sm:$0xff] %v986_v45  ;;  %857 = vst [vmem:[#allocation5 + $0x118] sm:$0xff] %v1022_v46 }
  0xee   :  { %v286_v49 = vpop.f32.mrf.mxu0  ;;  %v346_v50 = vpop.f32.mrf.mxu1 }
  0xef   :  { %v989_v51 = vpack.c.bf16 %v286_v49, %v284_v47  ;;  %v1025_v52 = vpack.c.bf16 %v346_v50, %v344_v48 }
  0xf0   :  { %v290_v53 = vpop.f32.mrf.mxu0  ;;  %v383_v54 = vpop.f32.mrf.mxu1 }
  0xf1   :  { %824 = vst [vmem:[#allocation5 + $0x3c] sm:$0xff] %v989_v51  ;;  %860 = vst [vmem:[#allocation5 + $0x12c] sm:$0xff] %v1025_v52 }
  0xf2   :  { %v292_v55 = vpop.f32.mrf.mxu0  ;;  %v385_v56 = vpop.f32.mrf.mxu1 }
  0xf3   :  { %v992_v57 = vpack.c.bf16 %v292_v55, %v290_v53  ;;  %v981_v58 = vpack.c.bf16 %v385_v56, %v383_v54 }
  0xf4   :  { %v294_v59 = vpop.f32.mrf.mxu0  ;;  %v387_v60 = vpop.f32.mrf.mxu1 }
  0xf5   :  { %827 = vst [vmem:[#allocation5 + $0x50] sm:$0xff] %v992_v57  ;;  %816 = vst [vmem:[#allocation5 + $0x8] sm:$0xff] %v981_v58 }
  0xf6   :  { %v296_v61 = vpop.f32.mrf.mxu0  ;;  %v389_v62 = vpop.f32.mrf.mxu1 }
  0xf7   :  { %v995_v63 = vpack.c.bf16 %v296_v61, %v294_v59  ;;  %v984_v0 = vpack.c.bf16 %v389_v62, %v387_v60 }
  0xf8   :  { %v300_v1 = vpop.f32.mrf.mxu0  ;;  %v393_v2 = vpop.f32.mrf.mxu1 }
  0xf9   :  { %830 = vst [vmem:[#allocation5 + $0x64] sm:$0xff] %v995_v63  ;;  %819 = vst [vmem:[#allocation5 + $0x1c] sm:$0xff] %v984_v0 }
  0xfa   :  { %v302_v3 = vpop.f32.mrf.mxu0  ;;  %v395_v4 = vpop.f32.mrf.mxu1 }
  0xfb   :  { %v998_v5 = vpack.c.bf16 %v302_v3, %v300_v1  ;;  %v987_v6 = vpack.c.bf16 %v395_v4, %v393_v2 }
  0xfc   :  { %v304_v7 = vpop.f32.mrf.mxu0  ;;  %v397_v8 = vpop.f32.mrf.mxu1 }
  0xfd   :  { %833 = vst [vmem:[#allocation5 + $0x78] sm:$0xff] %v998_v5  ;;  %822 = vst [vmem:[#allocation5 + $0x30] sm:$0xff] %v987_v6 }
  0xfe   :  { %v306_v9 = vpop.f32.mrf.mxu0  ;;  %v399_v10 = vpop.f32.mrf.mxu1 }
  0xff   :  { %v1001_v11 = vpack.c.bf16 %v306_v9, %v304_v7  ;;  %v990_v12 = vpack.c.bf16 %v399_v10, %v397_v8 }
 0x100   :  { %v310_v13 = vpop.f32.mrf.mxu0  ;;  %v403_v14 = vpop.f32.mrf.mxu1 }
 0x101   :  { %836 = vst [vmem:[#allocation5 + $0x8c] sm:$0xff] %v1001_v11  ;;  %825 = vst [vmem:[#allocation5 + $0x44] sm:$0xff] %v990_v12 }
 0x102   :  { %v312_v15 = vpop.f32.mrf.mxu0  ;;  %v405_v16 = vpop.f32.mrf.mxu1 }
 0x103   :  { %v1004_v17 = vpack.c.bf16 %v312_v15, %v310_v13  ;;  %v993_v18 = vpack.c.bf16 %v405_v16, %v403_v14 }
 0x104   :  { %v314_v19 = vpop.f32.mrf.mxu0  ;;  %v407_v20 = vpop.f32.mrf.mxu1 }
 0x105   :  { %839 = vst [vmem:[#allocation5 + $0xa0] sm:$0xff] %v1004_v17  ;;  %828 = vst [vmem:[#allocation5 + $0x58] sm:$0xff] %v993_v18 }
 0x106   :  { %v316_v21 = vpop.f32.mrf.mxu0  ;;  %v409_v22 = vpop.f32.mrf.mxu1 }
 0x107   :  { %v1007_v23 = vpack.c.bf16 %v316_v21, %v314_v19  ;;  %v996_v24 = vpack.c.bf16 %v409_v22, %v407_v20 }
 0x108   :  { %v320_v25 = vpop.f32.mrf.mxu0  ;;  %v413_v26 = vpop.f32.mrf.mxu1 }
 0x109   :  { %842 = vst [vmem:[#allocation5 + $0xb4] sm:$0xff] %v1007_v23  ;;  %831 = vst [vmem:[#allocation5 + $0x6c] sm:$0xff] %v996_v24 }
 0x10a   :  { %v322_v27 = vpop.f32.mrf.mxu0  ;;  %v415_v28 = vpop.f32.mrf.mxu1 }
 0x10b   :  { %v1010_v29 = vpack.c.bf16 %v322_v27, %v320_v25  ;;  %v999_v30 = vpack.c.bf16 %v415_v28, %v413_v26 }
 0x10c   :  { %v324_v31 = vpop.f32.mrf.mxu0  ;;  %v417_v32 = vpop.f32.mrf.mxu1 }
 0x10d   :  { %845 = vst [vmem:[#allocation5 + $0xc8] sm:$0xff] %v1010_v29  ;;  %834 = vst [vmem:[#allocation5 + $0x80] sm:$0xff] %v999_v30 }
 0x10e   :  { %v326_v33 = vpop.f32.mrf.mxu0  ;;  %v419_v34 = vpop.f32.mrf.mxu1 }
 0x10f   :  { %v1013_v35 = vpack.c.bf16 %v326_v33, %v324_v31  ;;  %v1002_v36 = vpack.c.bf16 %v419_v34, %v417_v32 }
 0x110   :  { %v423_v37 = vpop.f32.mrf.mxu1  ;;  %v1050_v38 = vpop.f32.mrf.mxu0 }
 0x111   :  { %848 = vst [vmem:[#allocation5 + $0xdc] sm:$0xff] %v1013_v35  ;;  %837 = vst [vmem:[#allocation5 + $0x94] sm:$0xff] %v1002_v36  ;;  %v988_v39 = vpack.c.bf16 %v1050_v38, %v1050_v38 }
 0x112   :  { %v425_v40 = vpop.f32.mrf.mxu1  ;;  %v496_v41 = vpop.f32.mrf.mxu0 }
 0x113   :  { %823 = vst [vmem:[#allocation5 + $0x38] sm:$0xf] %v988_v39  ;;  %v1005_v42 = vpack.c.bf16 %v425_v40, %v423_v37  ;;  %v982_v43 = vpack.c.bf16 %v496_v41, %v496_v41 }
 0x114   :  { %v427_v44 = vpop.f32.mrf.mxu1  ;;  %v1051_v45 = vpop.f32.mrf.mxu0 }
 0x115   :  { %840 = vst [vmem:[#allocation5 + $0xa8] sm:$0xff] %v1005_v42  ;;  %817 = vst [vmem:[#allocation5 + $0x10] sm:$0xf] %v982_v43  ;;  %v991_v46 = vpack.c.bf16 %v1051_v45, %v1051_v45 }
 0x116   :  { %v429_v47 = vpop.f32.mrf.mxu1  ;;  %v499_v48 = vpop.f32.mrf.mxu0 }
 0x117   :  { %826 = vst [vmem:[#allocation5 + $0x4c] sm:$0xf] %v991_v46  ;;  %v1008_v49 = vpack.c.bf16 %v429_v47, %v427_v44  ;;  %v985_v50 = vpack.c.bf16 %v499_v48, %v499_v48 }
 0x118   :  { %v433_v51 = vpop.f32.mrf.mxu1  ;;  %v1054_v52 = vpop.f32.mrf.mxu0 }
 0x119   :  { %843 = vst [vmem:[#allocation5 + $0xbc] sm:$0xff] %v1008_v49  ;;  %820 = vst [vmem:[#allocation5 + $0x24] sm:$0xf] %v985_v50  ;;  %v1000_v53 = vpack.c.bf16 %v1054_v52, %v1054_v52 }
 0x11a   :  { %v435_v54 = vpop.f32.mrf.mxu1  ;;  %v512_v55 = vpop.f32.mrf.mxu0 }
 0x11b   :  { %835 = vst [vmem:[#allocation5 + $0x88] sm:$0xf] %v1000_v53  ;;  %v1011_v56 = vpack.c.bf16 %v435_v54, %v433_v51  ;;  %v994_v57 = vpack.c.bf16 %v512_v55, %v512_v55 }
 0x11c   :  { %v437_v58 = vpop.f32.mrf.mxu1  ;;  %v1055_v59 = vpop.f32.mrf.mxu0 }
 0x11d   :  { %846 = vst [vmem:[#allocation5 + $0xd0] sm:$0xff] %v1011_v56  ;;  %829 = vst [vmem:[#allocation5 + $0x60] sm:$0xf] %v994_v57  ;;  %v1003_v60 = vpack.c.bf16 %v1055_v59, %v1055_v59 }
 0x11e   :  { %v439_v61 = vpop.f32.mrf.mxu1  ;;  %v515_v62 = vpop.f32.mrf.mxu0 }
 0x11f   :  { %838 = vst [vmem:[#allocation5 + $0x9c] sm:$0xf] %v1003_v60  ;;  %v1014_v63 = vpack.c.bf16 %v439_v61, %v437_v58  ;;  %v997_v0 = vpack.c.bf16 %v515_v62, %v515_v62 }
 0x120   :  { %v443_v1 = vpop.f32.mrf.mxu1  ;;  %v1058_v2 = vpop.f32.mrf.mxu0 }
 0x121   :  { %849 = vst [vmem:[#allocation5 + $0xe4] sm:$0xff] %v1014_v63  ;;  %832 = vst [vmem:[#allocation5 + $0x74] sm:$0xf] %v997_v0  ;;  %v1012_v3 = vpack.c.bf16 %v1058_v2, %v1058_v2 }
 0x122   :  { %v445_v4 = vpop.f32.mrf.mxu1  ;;  %v528_v5 = vpop.f32.mrf.mxu0 }
 0x123   :  { %847 = vst [vmem:[#allocation5 + $0xd8] sm:$0xf] %v1012_v3  ;;  %v1017_v6 = vpack.c.bf16 %v445_v4, %v443_v1  ;;  %v1006_v7 = vpack.c.bf16 %v528_v5, %v528_v5 }
 0x124   :  { %v447_v8 = vpop.f32.mrf.mxu1  ;;  %v1059_v9 = vpop.f32.mrf.mxu0 }
 0x125   :  { %852 = vst [vmem:[#allocation5 + $0xf8] sm:$0xff] %v1017_v6  ;;  %841 = vst [vmem:[#allocation5 + $0xb0] sm:$0xf] %v1006_v7  ;;  %v1015_v10 = vpack.c.bf16 %v1059_v9, %v1059_v9 }
 0x126   :  { %v449_v11 = vpop.f32.mrf.mxu1  ;;  %v531_v12 = vpop.f32.mrf.mxu0 }
 0x127   :  { %850 = vst [vmem:[#allocation5 + $0xec] sm:$0xf] %v1015_v10  ;;  %v1020_v13 = vpack.c.bf16 %v449_v11, %v447_v8  ;;  %v1009_v14 = vpack.c.bf16 %v531_v12, %v531_v12 }
 0x128   :  { %v453_v15 = vpop.f32.mrf.mxu1  ;;  %v1062_v16 = vpop.f32.mrf.mxu0 }
 0x129   :  { %855 = vst [vmem:[#allocation5 + $0x10c] sm:$0xff] %v1020_v13  ;;  %844 = vst [vmem:[#allocation5 + $0xc4] sm:$0xf] %v1009_v14  ;;  %v1024_v17 = vpack.c.bf16 %v1062_v16, %v1062_v16 }
 0x12a   :  { %v455_v18 = vpop.f32.mrf.mxu1  ;;  %v544_v19 = vpop.f32.mrf.mxu0 }
 0x12b   :  { %859 = vst [vmem:[#allocation5 + $0x128] sm:$0xf] %v1024_v17  ;;  %v1023_v20 = vpack.c.bf16 %v455_v18, %v453_v15  ;;  %v1018_v21 = vpack.c.bf16 %v544_v19, %v544_v19 }
 0x12c   :  { %v457_v22 = vpop.f32.mrf.mxu1  ;;  %v1063_v23 = vpop.f32.mrf.mxu0 }
 0x12d   :  { %858 = vst [vmem:[#allocation5 + $0x120] sm:$0xff] %v1023_v20  ;;  %853 = vst [vmem:[#allocation5 + $0x100] sm:$0xf] %v1018_v21  ;;  %v1027_v24 = vpack.c.bf16 %v1063_v23, %v1063_v23 }
 0x12e   :  { %v459_v25 = vpop.f32.mrf.mxu1  ;;  %v547_v26 = vpop.f32.mrf.mxu0 }
 0x12f   :  { %862 = vst [vmem:[#allocation5 + $0x13c] sm:$0xf] %v1027_v24  ;;  %v1026_v27 = vpack.c.bf16 %v459_v25, %v457_v22  ;;  %v1021_v28 = vpack.c.bf16 %v547_v26, %v547_v26 }
 0x131   :  { %861 = vst [vmem:[#allocation5 + $0x134] sm:$0xff] %v1026_v27  ;;  %856 = vst [vmem:[#allocation5 + $0x114] sm:$0xf] %v1021_v28 }
 0x132   :  { %1144 = shalt.err (!%p1141_p9)
}
 0x133   :  { %874 = dma.vmem_to_hbm [thread:$0]  %s869_s3, 5120, %s1260_s2, [#allocation4], %s1158_s12, %s1158_s12, %s1159_s13  }
 0x134   :  { %1155 = dma.done.wait [#allocation4], 5120  }
 0x135   :  { %1156 = vsyncadd [#allocation4], 4294962176 }
 0x136   :  { %878 = vsyncpa [#allocation3], 1 }
 0x137   :  { %879 = vsyncpa [#allocation4], 1 }

</bundles_post_ra>
